<compile_context>
chip_gen: v6e
topology: v6e:2x2x1
jax: 0.10.0
libtpu: 0.0.40
codegen_flags: <defaults>
</compile_context>

<pallas_src>
import jax
import jax.numpy as jnp
from jax.experimental import pallas as pl
from jax.experimental.pallas import tpu as pltpu


def _actor_critic_eval_kernel(
    state_ref, action_ref,
    w1_ref, b1_ref, w2_ref, b2_ref, w3_ref, b3_ref,
    out_ref,
):
    # Batch is on the lane axis throughout: state tile is [D, TB].
    x = state_ref[...]                                                    # [D, TB] f32

    # Layer 1: K = D is tiny; keep f32 operands to preserve raw state precision.
    h = jnp.tanh(jnp.dot(w1_ref[...], x,
                         preferred_element_type=jnp.float32) + b1_ref[...])   # [2H, TB]
    # Layers 2/3: bf16 MXU operands, f32 accumulation, f32 epilogue.
    h = jnp.tanh(jnp.dot(w2_ref[...], h.astype(w2_ref.dtype),
                         preferred_element_type=jnp.float32) + b2_ref[...])   # [2H, TB]
    y = jnp.dot(w3_ref[...], h.astype(w3_ref.dtype),
                preferred_element_type=jnp.float32) + b3_ref[...]             # [A+1, TB]

    num_actions = y.shape[0] - 1
    logits = y[:num_actions, :]                                           # [A, TB]
    value = y[num_actions:, :]                                            # [1, TB]

    # Numerically stable log-softmax pieces.  Reductions run over the sublane
    # action axis; batch stays dense on lanes.
    m = jnp.max(logits, axis=0, keepdims=True)                            # [1, TB]
    z = logits - m
    ez = jnp.exp(z)
    sum_ez = jnp.sum(ez, axis=0, keepdims=True)                           # [1, TB]
    lse = jnp.log(sum_ez)                                                 # [1, TB]
    inv_sum = pl.reciprocal(sum_ez, approx=True)                          # EUP slot

    tb = logits.shape[1]
    act_ids = jax.lax.broadcasted_iota(jnp.int32, (num_actions, tb), 0)
    one_hot = (act_ids == action_ref[...]).astype(jnp.float32)            # [A, TB]

    # log_prob(a) = z[a] - lse ;  entropy = lse - sum(p * z),  p = ez * inv_sum
    logp = jnp.sum(one_hot * z, axis=0, keepdims=True) - lse              # [1, TB]
    entropy = lse - inv_sum * jnp.sum(ez * z, axis=0, keepdims=True)      # [1, TB]

    # Single lane-dense store of the packed [3, TB] result.
    out_ref[...] = jnp.concatenate([logp, value, entropy], axis=0)


def _round_up(x, m):
    return ((x + m - 1) // m) * m


def _pick_batch_tile(batch):
    # Large tiles amortize the ~0.35us/grid-step pipeline overhead (this kernel
    # is overhead-bound), but keep >=2 grid steps when possible so the
    # "parallel" batch axis can be sharded across both v7x TensorCores.
    # Tiles are multiples of 128 lanes, capped at 1024; VMEM is not a
    # constraint even at the cap (<2 MiB total per tile).
    b = _round_up(batch, 128)
    if b <= 128:
        return 128
    return min(_round_up(b // 2, 128), 1024)


def fuse_actor_critic_params(params, *, mxu_dtype=jnp.bfloat16):
    """Fuse actor+critic weights once, OUTSIDE the evaluate() hot loop.

    Returns fused arrays in [out, in] layout: layer-1 concatenated, layer-2
    block-diagonal, layer-3 packing logits and value into one matmul.
    """
    f32 = jnp.float32
    H = params["w2a"].shape[0]
    A = params["w3a"].shape[1]

    W1 = jnp.concatenate([params["w1a"], params["w1c"]], axis=1).T.astype(f32)   # [2H, D]
    b1 = jnp.concatenate([params["b1a"], params["b1c"]], axis=1).T.astype(f32)   # [2H, 1]
    W2 = (jnp.zeros((2 * H, 2 * H), f32)
          .at[:H, :H].set(params["w2a"])
          .at[H:, H:].set(params["w2c"])).T.astype(mxu_dtype)                    # [2H, 2H]
    b2 = jnp.concatenate([params["b2a"], params["b2c"]], axis=1).T.astype(f32)   # [2H, 1]
    W3 = (jnp.zeros((2 * H, A + 1), f32)
          .at[:H, :A].set(params["w3a"])
          .at[H:, A:].set(params["w3c"])).T.astype(mxu_dtype)                    # [A+1, 2H]
    b3 = jnp.concatenate([params["b3a"], params["b3c"]], axis=1).T.astype(f32)   # [A+1, 1]
    return dict(W1=W1, b1=b1, W2=W2, b2=b2, W3=W3, b3=b3)


def actor_critic_evaluate(state, action, fused, *, batch_tile=None):
    """state: [B, D] f32, action: [B] int, fused: output of fuse_actor_critic_params.

    Returns (action_logprobs [B], state_value [B], dist_entropy [B]).
    """
    f32 = jnp.float32
    B, D = state.shape
    H2 = fused["W1"].shape[0]          # 2H
    A1 = fused["W3"].shape[0]          # A + 1

    TB = batch_tile if batch_tile is not None else _pick_batch_tile(B)
    B_pad = _round_up(B, TB)
    pad = B_pad - B

    # Layout plumbing only: batch goes onto the lane axis.  jnp.pad (not
    # zeros + dynamic-update-slice) keeps this to a single fused XLA copy.
    state_t = jnp.pad(state.astype(f32).T, ((0, 0), (0, pad)))        # [D, B_pad]
    action_row = jnp.pad(action.astype(jnp.int32), (0, pad)).reshape(1, B_pad)

    const = lambda i: (0, 0)   # weights stay VMEM-resident across grid steps

    out = pl.pallas_call(
        _actor_critic_eval_kernel,
        out_shape=jax.ShapeDtypeStruct((3, B_pad), f32),
        grid_spec=pltpu.PrefetchScalarGridSpec(
            num_scalar_prefetch=0,
            grid=(B_pad // TB,),
            in_specs=[
                pl.BlockSpec((D, TB), lambda i: (0, i)),        # state tile
                pl.BlockSpec((1, TB), lambda i: (0, i)),        # action tile
                pl.BlockSpec((H2, D), const),                   # fused W1 (f32)
                pl.BlockSpec((H2, 1), const),                   # fused b1
                pl.BlockSpec((H2, H2), const),                  # fused W2 (block-diag, bf16)
                pl.BlockSpec((H2, 1), const),                   # fused b2
                pl.BlockSpec((A1, H2), const),                  # fused W3 (logits|value, bf16)
                pl.BlockSpec((A1, 1), const),                   # fused b3
            ],
            out_specs=pl.BlockSpec((3, TB), lambda i: (0, i)),  # lane-dense packed out
        ),
        compiler_params=pltpu.CompilerParams(
            dimension_semantics=("parallel",),       # megacore sharding on v7x
            vmem_limit_bytes=32 * 1024 * 1024,       # footprint is tiny; safe everywhere
        ),
    )(state_t, action_row,
      fused["W1"], fused["b1"], fused["W2"], fused["b2"], fused["W3"], fused["b3"])

    # torch.squeeze(state_value) semantics + 1-D logprob/entropy.
    return out[0, :B], out[1, :B], out[2, :B]


def init_params(key, state_dim, hidden, action_dim):
    ks = jax.random.split(key, 12)

    def lin(kw, kb, fan_in, fan_out):
        bound = 1.0 / jnp.sqrt(fan_in)
        w = jax.random.uniform(kw, (fan_in, fan_out), jnp.float32, -bound, bound)
        b = jax.random.uniform(kb, (1, fan_out), jnp.float32, -bound, bound)
        return w, b

    w1a, b1a = lin(ks[0], ks[1], state_dim, hidden)
    w2a, b2a = lin(ks[2], ks[3], hidden, hidden)
    w3a, b3a = lin(ks[4], ks[5], hidden, action_dim)
    w1c, b1c = lin(ks[6], ks[7], state_dim, hidden)
    w2c, b2c = lin(ks[8], ks[9], hidden, hidden)
    w3c, b3c = lin(ks[10], ks[11], hidden, 1)
    return dict(w1a=w1a, b1a=b1a, w2a=w2a, b2a=b2a, w3a=w3a, b3a=b3a,
                w1c=w1c, b1c=b1c, w2c=w2c, b2c=b2c, w3c=w3c, b3c=b3c)


def _reference_evaluate(state, action, p):
    """Pure-JAX reference mirroring ActorCritic.evaluate."""
    def mlp(x, w1, b1, w2, b2, w3, b3):
        h = jnp.tanh(x @ w1 + b1)
        h = jnp.tanh(h @ w2 + b2)
        return h @ w3 + b3

    logits = mlp(state, p["w1a"], p["b1a"], p["w2a"], p["b2a"], p["w3a"], p["b3a"])
    value = mlp(state, p["w1c"], p["b1c"], p["w2c"], p["b2c"], p["w3c"], p["b3c"])[:, 0]
    logz = jax.nn.log_softmax(logits, axis=-1)
    logp = jnp.take_along_axis(logz, action[:, None].astype(jnp.int32), axis=-1)[:, 0]
    ent = -jnp.sum(jnp.exp(logz) * logz, axis=-1)
    return logp, value, ent


if __name__ == "__main__":
    # TODO(synk): `act()` does stochastic Categorical sampling + Python-side
    # memory appends; only the deterministic `evaluate` math is kernelized.
    B, D, H, A = 300, 5, 64, 3   # non-multiple batch exercises padding + 2-step grid
    key = jax.random.PRNGKey(0)
    k_state, k_act, k_param = jax.random.split(key, 3)

    state = jax.random.normal(k_state, (B, D), dtype=jnp.float32)
    action = jax.random.randint(k_act, (B,), 0, A, dtype=jnp.int32)
    params = init_params(k_param, D, H, A)

    # Weight fusion runs once per policy update, outside the evaluate hot loop.
    fused = jax.tree_util.tree_map(lambda x: x, fuse_actor_critic_params(params))

    evaluate = jax.jit(actor_critic_evaluate)
    logp, value, entropy = evaluate(state, action, fused)
    jax.block_until_ready((logp, value, entropy))

    assert logp.shape == (B,) and value.shape == (B,) and entropy.shape == (B,)

    ref_logp, ref_value, ref_ent = _reference_evaluate(state, action, params)
    # bf16 MXU operands on layers 2/3 (f32 accumulate) -> slightly wider tolerance.
    assert bool(jnp.allclose(logp, ref_logp, atol=5e-3, rtol=5e-3))
    assert bool(jnp.allclose(value, ref_value, atol=5e-3, rtol=5e-3))
    assert bool(jnp.allclose(entropy, ref_ent, atol=5e-3, rtol=5e-3))

    print("KERNEL_OK")
</pallas_src>

<mosaic_0001>
module attributes {stable_mosaic.version = 11 : i64} {
  func.func @_actor_critic_eval_kernel(%arg0: i32, %arg1: memref<5x256xf32, #tpu.memory_space<vmem>>, %arg2: memref<1x256xi32, #tpu.memory_space<vmem>>, %arg3: memref<128x5xf32, #tpu.memory_space<vmem>>, %arg4: memref<128x1xf32, #tpu.memory_space<vmem>>, %arg5: memref<128x128xbf16, #tpu.memory_space<vmem>>, %arg6: memref<128x1xf32, #tpu.memory_space<vmem>>, %arg7: memref<4x128xbf16, #tpu.memory_space<vmem>>, %arg8: memref<4x1xf32, #tpu.memory_space<vmem>>, %arg9: memref<3x256xf32, #tpu.memory_space<vmem>>) attributes {dimension_semantics = [#tpu.dimension_semantics<parallel>], iteration_bounds = array<i64: 2>, scalar_prefetch = 0 : i64, scratch_operands = 0 : i64, tpu.core_type = #tpu.core_type<tc>, window_params = [{transform_indices = @transform_0, window_bounds = array<i64: 5, 256>}, {transform_indices = @transform_1, window_bounds = array<i64: 1, 256>}, {pipeline_mode = #tpu.pipeline_mode<synchronous>, transform_indices = @transform_2, window_bounds = array<i64: 128, 5>}, {pipeline_mode = #tpu.pipeline_mode<synchronous>, transform_indices = @transform_3, window_bounds = array<i64: 128, 1>}, {pipeline_mode = #tpu.pipeline_mode<synchronous>, transform_indices = @transform_4, window_bounds = array<i64: 128, 128>}, {pipeline_mode = #tpu.pipeline_mode<synchronous>, transform_indices = @transform_5, window_bounds = array<i64: 128, 1>}, {pipeline_mode = #tpu.pipeline_mode<synchronous>, transform_indices = @transform_6, window_bounds = array<i64: 4, 128>}, {pipeline_mode = #tpu.pipeline_mode<synchronous>, transform_indices = @transform_7, window_bounds = array<i64: 4, 1>}, {transform_indices = @transform_8, window_bounds = array<i64: 3, 256>}]} {
    %c0 = arith.constant 0 : index
    %c0_0 = arith.constant 0 : index
    %0 = vector.load %arg1[%c0, %c0_0] : memref<5x256xf32, #tpu.memory_space<vmem>>, vector<5x256xf32>
    %c0_1 = arith.constant 0 : index
    %c0_2 = arith.constant 0 : index
    %1 = vector.load %arg3[%c0_1, %c0_2] : memref<128x5xf32, #tpu.memory_space<vmem>>, vector<128x5xf32>
    %cst = arith.constant dense<0.000000e+00> : vector<128x256xf32>
    %2 = tpu.matmul %1, %0, %cst {dimension_numbers = #tpu.dot_dimension_numbers<[1], [0], [0], [1], [0, 0, 1, 1], [], []>} : vector<128x5xf32>, vector<5x256xf32>, vector<128x256xf32> -> vector<128x256xf32>
    %c0_3 = arith.constant 0 : index
    %c0_4 = arith.constant 0 : index
    %3 = vector.load %arg4[%c0_3, %c0_4] : memref<128x1xf32, #tpu.memory_space<vmem>>, vector<128x1xf32>
    %4 = vector.broadcast %3 : vector<128x1xf32> to vector<128x256xf32>
    %5 = arith.addf %2, %4 : vector<128x256xf32>
    %6 = math.tanh %5 : vector<128x256xf32>
    %c0_5 = arith.constant 0 : index
    %c0_6 = arith.constant 0 : index
    %7 = vector.load %arg5[%c0_5, %c0_6] : memref<128x128xbf16, #tpu.memory_space<vmem>>, vector<128x128xbf16>
    %8 = arith.truncf %6 : vector<128x256xf32> to vector<128x256xbf16>
    %cst_7 = arith.constant dense<0.000000e+00> : vector<128x256xf32>
    %9 = tpu.matmul %7, %8, %cst_7 {dimension_numbers = #tpu.dot_dimension_numbers<[1], [0], [0], [1], [0, 0, 1, 1], [], []>} : vector<128x128xbf16>, vector<128x256xbf16>, vector<128x256xf32> -> vector<128x256xf32>
    %c0_8 = arith.constant 0 : index
    %c0_9 = arith.constant 0 : index
    %10 = vector.load %arg6[%c0_8, %c0_9] : memref<128x1xf32, #tpu.memory_space<vmem>>, vector<128x1xf32>
    %11 = vector.broadcast %10 : vector<128x1xf32> to vector<128x256xf32>
    %12 = arith.addf %9, %11 : vector<128x256xf32>
    %13 = math.tanh %12 : vector<128x256xf32>
    %c0_10 = arith.constant 0 : index
    %c0_11 = arith.constant 0 : index
    %14 = vector.load %arg7[%c0_10, %c0_11] : memref<4x128xbf16, #tpu.memory_space<vmem>>, vector<4x128xbf16>
    %15 = arith.truncf %13 : vector<128x256xf32> to vector<128x256xbf16>
    %cst_12 = arith.constant dense<0.000000e+00> : vector<4x256xf32>
    %16 = tpu.matmul %14, %15, %cst_12 {dimension_numbers = #tpu.dot_dimension_numbers<[1], [0], [0], [1], [0, 0, 1, 1], [], []>} : vector<4x128xbf16>, vector<128x256xbf16>, vector<4x256xf32> -> vector<4x256xf32>
    %c0_13 = arith.constant 0 : index
    %c0_14 = arith.constant 0 : index
    %17 = vector.load %arg8[%c0_13, %c0_14] : memref<4x1xf32, #tpu.memory_space<vmem>>, vector<4x1xf32>
    %18 = vector.broadcast %17 : vector<4x1xf32> to vector<4x256xf32>
    %19 = arith.addf %16, %18 : vector<4x256xf32>
    %20 = vector.extract_strided_slice %19 {offsets = [0, 0], sizes = [3, 256], strides = [1, 1]} : vector<4x256xf32> to vector<3x256xf32>
    %21 = vector.extract_strided_slice %19 {offsets = [3, 0], sizes = [1, 256], strides = [1, 1]} : vector<4x256xf32> to vector<1x256xf32>
    %cst_15 = arith.constant dense<0xFF800000> : vector<256xf32>
    %22 = vector.multi_reduction <maximumf>, %20, %cst_15 [0] : vector<3x256xf32> to vector<256xf32>
    %23 = vector.shape_cast %22 : vector<256xf32> to vector<1x256xf32>
    %24 = vector.broadcast %23 : vector<1x256xf32> to vector<3x256xf32>
    %25 = arith.subf %20, %24 : vector<3x256xf32>
    %26 = math.exp %25 : vector<3x256xf32>
    %cst_16 = arith.constant dense<0.000000e+00> : vector<256xf32>
    %27 = vector.multi_reduction <add>, %26, %cst_16 [0] : vector<3x256xf32> to vector<256xf32>
    %28 = vector.shape_cast %27 : vector<256xf32> to vector<1x256xf32>
    %29 = math.log %28 : vector<1x256xf32>
    %30 = tpu.reciprocal %28 {approx = true} : vector<1x256xf32> -> vector<1x256xf32>
    %31 = tpu.iota {dimensions = array<i32: 0>} : vector<3x256xi32>
    %c0_17 = arith.constant 0 : index
    %c0_18 = arith.constant 0 : index
    %32 = vector.load %arg2[%c0_17, %c0_18] : memref<1x256xi32, #tpu.memory_space<vmem>>, vector<1x256xi32>
    %33 = vector.broadcast %32 : vector<1x256xi32> to vector<3x256xi32>
    %34 = arith.cmpi eq, %31, %33 : vector<3x256xi32>
    %35 = arith.extui %34 : vector<3x256xi1> to vector<3x256xi32>
    %36 = arith.sitofp %35 : vector<3x256xi32> to vector<3x256xf32>
    %37 = arith.mulf %36, %25 : vector<3x256xf32>
    %cst_19 = arith.constant dense<0.000000e+00> : vector<256xf32>
    %38 = vector.multi_reduction <add>, %37, %cst_19 [0] : vector<3x256xf32> to vector<256xf32>
    %39 = vector.shape_cast %38 : vector<256xf32> to vector<1x256xf32>
    %40 = arith.subf %39, %29 : vector<1x256xf32>
    %41 = arith.mulf %26, %25 : vector<3x256xf32>
    %cst_20 = arith.constant dense<0.000000e+00> : vector<256xf32>
    %42 = vector.multi_reduction <add>, %41, %cst_20 [0] : vector<3x256xf32> to vector<256xf32>
    %43 = vector.shape_cast %42 : vector<256xf32> to vector<1x256xf32>
    %44 = arith.mulf %30, %43 : vector<1x256xf32>
    %45 = arith.subf %29, %44 : vector<1x256xf32>
    %46 = tpu.concatenate %40, %21, %45 in 0 : vector<1x256xf32>, vector<1x256xf32>, vector<1x256xf32> -> vector<3x256xf32>
    %c0_21 = arith.constant 0 : index
    %c0_22 = arith.constant 0 : index
    %47 = vector.load %arg9[%c0_21, %c0_22] : memref<3x256xf32, #tpu.memory_space<vmem>>, vector<3x256xf32>
    tpu.vector_store %arg9[%c0_21, %c0_22], %46 {strides = array<i32>} : memref<3x256xf32, #tpu.memory_space<vmem>>, vector<3x256xf32>,
    return
  }
  func.func @transform_0(%arg0: i32) -> (i32, i32) {
    %c0_i32 = arith.constant 0 : i32
    %c0_i32_0 = arith.constant 0 : i32
    return %c0_i32, %arg0 : i32, i32
  }
  func.func @transform_1(%arg0: i32) -> (i32, i32) {
    %c0_i32 = arith.constant 0 : i32
    %c0_i32_0 = arith.constant 0 : i32
    return %c0_i32, %arg0 : i32, i32
  }
  func.func @transform_2(%arg0: i32) -> (i32, i32) {
    %c0_i32 = arith.constant 0 : i32
    %c0_i32_0 = arith.constant 0 : i32
    %c0_i32_1 = arith.constant 0 : i32
    return %c0_i32, %c0_i32_0 : i32, i32
  }
  func.func @transform_3(%arg0: i32) -> (i32, i32) {
    %c0_i32 = arith.constant 0 : i32
    %c0_i32_0 = arith.constant 0 : i32
    %c0_i32_1 = arith.constant 0 : i32
    return %c0_i32, %c0_i32_0 : i32, i32
  }
  func.func @transform_4(%arg0: i32) -> (i32, i32) {
    %c0_i32 = arith.constant 0 : i32
    %c0_i32_0 = arith.constant 0 : i32
    %c0_i32_1 = arith.constant 0 : i32
    return %c0_i32, %c0_i32_0 : i32, i32
  }
  func.func @transform_5(%arg0: i32) -> (i32, i32) {
    %c0_i32 = arith.constant 0 : i32
    %c0_i32_0 = arith.constant 0 : i32
    %c0_i32_1 = arith.constant 0 : i32
    return %c0_i32, %c0_i32_0 : i32, i32
  }
  func.func @transform_6(%arg0: i32) -> (i32, i32) {
    %c0_i32 = arith.constant 0 : i32
    %c0_i32_0 = arith.constant 0 : i32
    %c0_i32_1 = arith.constant 0 : i32
    return %c0_i32, %c0_i32_0 : i32, i32
  }
  func.func @transform_7(%arg0: i32) -> (i32, i32) {
    %c0_i32 = arith.constant 0 : i32
    %c0_i32_0 = arith.constant 0 : i32
    %c0_i32_1 = arith.constant 0 : i32
    return %c0_i32, %c0_i32_0 : i32, i32
  }
  func.func @transform_8(%arg0: i32) -> (i32, i32) {
    %c0_i32 = arith.constant 0 : i32
    %c0_i32_0 = arith.constant 0 : i32
    return %c0_i32, %arg0 : i32, i32
  }
}

</mosaic_0001>

<bundles_post_ra>
// kernel: actor_critic_evaluate.1
= control target key start
LH: loop header
LB: loop body
LE: loop exit
PB: predicated region body
PF: predicated region fallthrough
CT: control target
= control target key end

     0   :  { %s1510_s27 = smov 0   ;;  %s1970_s0 = inlined_call_operand.vmem [shape: f32[5,512], index: 0, kind: input, shape index: {}]   ;;  %s1971_s1 = inlined_call_operand.vmem [shape: s32[1,512], index: 1, kind: input, shape index: {}]   ;;  %s1972_s2 = inlined_call_operand.vmem [shape: f32[128,5], index: 2, kind: input, shape index: {}]   ;;  %s1973_s3 = inlined_call_operand.vmem [shape: f32[128,1], index: 3, kind: input, shape index: {}]   ;;  %s1974_s4 = inlined_call_operand.vmem [shape: bf16[128,128], index: 4, kind: input, shape index: {}]   ;;  %s1975_s5 = inlined_call_operand.vmem [shape: f32[128,1], index: 5, kind: input, shape index: {}]   ;;  %s1976_s6 = inlined_call_operand.vmem [shape: bf16[4,128], index: 6, kind: input, shape index: {}]   ;;  %s1977_s7 = inlined_call_operand.vmem [shape: f32[4,1], index: 7, kind: input, shape index: {}]   ;;  %s1978_s8 = inlined_call_operand.vmem [shape: f32[3,512], index: 8, kind: output, shape index: {}]  }
   0x1 LB: > { %s1255_s28 = sadd.s32 4294967295, %s1461_s27   ;;  %p1259_p0 = scmp.ge.s32.totalorder %s1461_s27, 1  ;;  %s1461_s27 = sphi %s1510_s27, %s18_s27  }
   0x2   : > { %p273_p1 = scmp.lt.s32.totalorder %s1461_s27, 3 }
   0x4   : > { %p274_p2 = pnand %p1259_p0, %p273_p1 }
   0x5   : > { %s1260_s29 = sshll.u32 (!%p274_p2), %s1255_s28, 1 }
   0x6   : > { %277 = sbr.rel (%p274_p2) target bundleno = 891 (0x37b), region = 52  ;;  %p312_p3 = scmp.lt.s32.totalorder (!%p274_p2), %s1260_s29, 3 }
   0xb   : > { %v1463_v0 = vmov 0.0   ;;  %v1464_v1 = vmov 0   ;;  %s1980_s29 = smov (!%p312_p3, %s1260_s29), 3  ;;  %v361_v2 = vld [vmem:[%s1973_s3 + $0x70] sm:$0xff]  ;;  %vm492_vm0 = vcmask 1044480   ;;  %v359_v3 = vld [vmem:[%s1973_s3 + $0x60] sm:$0xff] }
   0xc   : > { %563 = vmatprep.mubr.f32.mxu0 %v1463_v0  ;;  %1305 = vset.pattern.permute.xlu0 %v1464_v1  ;;  %s1261_s10 = sshll.u32 %s1980_s29, 3  ;;  %v331_v4 = vld [vmem:[%s1972_s2] sm:$0xff]  ;;  %v362_v5 = vld [vmem:[%s1973_s3 + $0x78] sm:$0xff]  ;;  %vm443_vm1 = vcmask 39936   ;;  %v360_v8 = vld [vmem:[%s1973_s3 + $0x68] sm:$0xff]  ;;  %vm1077_vm2 = vcmask 1042432  }
   0xd   : > { %1306 = vset.pattern.permute.xlu1 %v1464_v1  ;;  %900 = vmatprep.mubr.bf16.mxu1 %v1464_v1  ;;  %s315_s15 = scalar_lea.vmem %s1970_s0, %s1261_s10  ;;  %v357_v9 = vld [vmem:[%s1973_s3 + $0x50] sm:$0xff]  ;;  %v332_v10 = vld [vmem:[%s1972_s2 + $0x8] sm:$0xff]  ;;  %v358_v11 = vld [vmem:[%s1973_s3 + $0x58] sm:$0xff]  ;;  %s320_s10 = scalar_lea.vmem %s1971_s1, %s1980_s29  ;;  %vm1179_vm5 = vcmask 1040384   ;;  %vm1182_vm6 = vcmask 1041408  }
   0xe   : > { %435 = vperm.xlu0 %1305, %v361_v2   ;;  %425 = vperm.xlu1 %1306, %v359_v3   ;;  %v330_v6 = vld [vmem:[%s315_s15 + $0x8] sm:$0x1f]  ;;  %v329_v7 = vld [vmem:[%s315_s15] sm:$0x1f]  ;;  %v333_v13 = vld [vmem:[%s1972_s2 + $0x10] sm:$0xff]  ;;  %s1264_s11 = sshll.u32 %s1980_s29, 2 }
   0xf   : > { %1265 = vmatprep.subr.msk.mxu0 %vm492_vm0, %v330_v6  ;;  %v355_v12 = vld [vmem:[%s1973_s3 + $0x40] sm:$0xff]  ;;  %v356_v14 = vld [vmem:[%s1973_s3 + $0x48] sm:$0xff]  ;;  %v334_v15 = vld [vmem:[%s1972_s2 + $0x18] sm:$0xff]  ;;  %s326_s14 = scalar_lea.vmem %s1978_s8, %s1264_s11 }
  0x10   : > { %1266 = vmatpush1.msk.msra.mxu0 %vm492_vm0, %v329_v7  ;;  %v353_v16 = vld [vmem:[%s1973_s3 + $0x30] sm:$0xff]  ;;  %v354_v17 = vld [vmem:[%s1973_s3 + $0x38] sm:$0xff]  ;;  %v351_v18 = vld [vmem:[%s1973_s3 + $0x20] sm:$0xff] }
  0x11   : > { %1267 = vmatmul.mubr.msk.f32.vlgmr.msra.gmra.mxu0 %vm443_vm1, %v331_v4  ;;  %v335_v19 = vld [vmem:[%s1972_s2 + $0x20] sm:$0xff]  ;;  %v352_v20 = vld [vmem:[%s1973_s3 + $0x28] sm:$0xff]  ;;  %v349_v21 = vld [vmem:[%s1973_s3 + $0x10] sm:$0xff] }
  0x12   : > { %440 = vperm.xlu0 %1305, %v362_v5   ;;  %430 = vperm.xlu1 %1306, %v360_v8   ;;  %v336_v22 = vld [vmem:[%s1972_s2 + $0x28] sm:$0xff]  ;;  %v350_v23 = vld [vmem:[%s1973_s3 + $0x18] sm:$0xff]  ;;  %v347_v24 = vld [vmem:[%s1973_s3] sm:$0xff] }
  0x13   : > { %569 = vmatprep.mubr.f32.mxu0 %v1463_v0  ;;  %v337_v25 = vld [vmem:[%s1972_s2 + $0x30] sm:$0xff]  ;;  %v348_v26 = vld [vmem:[%s1973_s3 + $0x8] sm:$0xff]  ;;  %v338_v28 = vld [vmem:[%s1972_s2 + $0x38] sm:$0xff] }
  0x14   : > { %v738_v27 = vld [vmem:[%s1975_s5 + $0x70] sm:$0xff]  ;;  %v739_v29 = vld [vmem:[%s1975_s5 + $0x78] sm:$0xff]  ;;  %v736_v30 = vld [vmem:[%s1975_s5 + $0x60] sm:$0xff] }
  0x15   : > { %1268 = vmatmul.mubr.msk.f32.gmra.mxu0 %vm443_vm1, %v332_v10  ;;  %v339_v31 = vld [vmem:[%s1972_s2 + $0x40] sm:$0xff]  ;;  %v737_v32 = vld [vmem:[%s1975_s5 + $0x68] sm:$0xff]  ;;  %v734_v33 = vld [vmem:[%s1975_s5 + $0x50] sm:$0xff] }
  0x16   : > { %415 = vperm.xlu0 %1305, %v357_v9   ;;  %420 = vperm.xlu1 %1306, %v358_v11   ;;  %v340_v34 = vld [vmem:[%s1972_s2 + $0x48] sm:$0xff]  ;;  %v735_v35 = vld [vmem:[%s1975_s5 + $0x58] sm:$0xff]  ;;  %v732_v36 = vld [vmem:[%s1975_s5 + $0x40] sm:$0xff] }
  0x17   : > { %575 = vmatprep.mubr.f32.mxu0 %v1463_v0  ;;  %v341_v37 = vld [vmem:[%s1972_s2 + $0x50] sm:$0xff]  ;;  %v733_v38 = vld [vmem:[%s1975_s5 + $0x48] sm:$0xff]  ;;  %v342_v40 = vld [vmem:[%s1972_s2 + $0x58] sm:$0xff] }
  0x18   : > { %v730_v39 = vld [vmem:[%s1975_s5 + $0x30] sm:$0xff]  ;;  %v731_v41 = vld [vmem:[%s1975_s5 + $0x38] sm:$0xff]  ;;  %v728_v42 = vld [vmem:[%s1975_s5 + $0x20] sm:$0xff] }
  0x19   : > { %1269 = vmatmul.mubr.msk.f32.gmra.mxu0 %vm443_vm1, %v333_v13  ;;  %v343_v43 = vld [vmem:[%s1972_s2 + $0x60] sm:$0xff]  ;;  %v729_v44 = vld [vmem:[%s1975_s5 + $0x28] sm:$0xff]  ;;  %v726_v45 = vld [vmem:[%s1975_s5 + $0x10] sm:$0xff] }
  0x1a   : > { %405 = vperm.xlu0 %1305, %v355_v12   ;;  %410 = vperm.xlu1 %1306, %v356_v14   ;;  %v344_v46 = vld [vmem:[%s1972_s2 + $0x68] sm:$0xff]  ;;  %v727_v47 = vld [vmem:[%s1975_s5 + $0x18] sm:$0xff]  ;;  %v724_v48 = vld [vmem:[%s1975_s5] sm:$0xff] }
  0x1b   : > { %581 = vmatprep.mubr.f32.mxu0 %v1463_v0  ;;  %v345_v49 = vld [vmem:[%s1972_s2 + $0x70] sm:$0xff]  ;;  %v725_v50 = vld [vmem:[%s1975_s5 + $0x8] sm:$0xff]  ;;  %v1030_v51 = vld [vmem:[%s1977_s7] sm:$0xf] }
  0x1c   : > { %v346_v52 = vld [vmem:[%s1972_s2 + $0x78] sm:$0xff] }
  0x1d   : > { %1270 = vmatmul.mubr.msk.f32.gmra.mxu0 %vm443_vm1, %v334_v15 }
  0x1e   : > { %395 = vperm.xlu0 %1305, %v353_v16   ;;  %400 = vperm.xlu1 %1306, %v354_v17  }
  0x1f   : > { %587 = vmatprep.mubr.f32.mxu0 %v1463_v0 }
  0x21   : > { %1271 = vmatmul.mubr.msk.f32.gmra.mxu0 %vm443_vm1, %v335_v19 }
  0x22   : > { %385 = vperm.xlu0 %1305, %v351_v18   ;;  %390 = vperm.xlu1 %1306, %v352_v20  }
  0x23   : > { %593 = vmatprep.mubr.f32.mxu0 %v1463_v0 }
  0x25   : > { %1272 = vmatmul.mubr.msk.f32.gmra.mxu0 %vm443_vm1, %v336_v22 }
  0x26   : > { %375 = vperm.xlu0 %1305, %v349_v21   ;;  %380 = vperm.xlu1 %1306, %v350_v23  }
  0x27   : > { %599 = vmatprep.mubr.f32.mxu0 %v1463_v0 }
  0x29   : > { %1273 = vmatmul.mubr.msk.f32.gmra.mxu0 %vm443_vm1, %v337_v25 }
  0x2a   : > { %365 = vperm.xlu0 %1305, %v347_v24   ;;  %370 = vperm.xlu1 %1306, %v348_v26  }
  0x2b   : > { %605 = vmatprep.mubr.f32.mxu0 %v1463_v0 }
  0x2d   : > { %1274 = vmatmul.mubr.msk.f32.gmra.mxu0 %vm443_vm1, %v338_v28 }
  0x2e   : > { %812 = vperm.xlu0 %1305, %v738_v27   ;;  %817 = vperm.xlu1 %1306, %v739_v29  }
  0x2f   : > { %611 = vmatprep.mubr.f32.mxu0 %v1463_v0 }
  0x31   : > { %1275 = vmatmul.mubr.msk.f32.gmra.mxu0 %vm443_vm1, %v339_v31 }
  0x32   : > { %802 = vperm.xlu0 %1305, %v736_v30   ;;  %807 = vperm.xlu1 %1306, %v737_v32  }
  0x33   : > { %617 = vmatprep.mubr.f32.mxu0 %v1463_v0 }
  0x35   : > { %1276 = vmatmul.mubr.msk.f32.gmra.mxu0 %vm443_vm1, %v340_v34 }
  0x36   : > { %792 = vperm.xlu0 %1305, %v734_v33   ;;  %797 = vperm.xlu1 %1306, %v735_v35  }
  0x37   : > { %623 = vmatprep.mubr.f32.mxu0 %v1463_v0 }
  0x39   : > { %1277 = vmatmul.mubr.msk.f32.gmra.mxu0 %vm443_vm1, %v341_v37 }
  0x3a   : > { %782 = vperm.xlu0 %1305, %v732_v36   ;;  %787 = vperm.xlu1 %1306, %v733_v38  }
  0x3b   : > { %629 = vmatprep.mubr.f32.mxu0 %v1463_v0 }
  0x3d   : > { %1278 = vmatmul.mubr.msk.f32.gmra.mxu0 %vm443_vm1, %v342_v40 }
  0x3e   : > { %772 = vperm.xlu0 %1305, %v730_v39   ;;  %777 = vperm.xlu1 %1306, %v731_v41  }
  0x3f   : > { %635 = vmatprep.mubr.f32.mxu0 %v1463_v0 }
  0x41   : > { %1279 = vmatmul.mubr.msk.f32.gmra.mxu0 %vm443_vm1, %v343_v43 }
  0x42   : > { %762 = vperm.xlu0 %1305, %v728_v42   ;;  %767 = vperm.xlu1 %1306, %v729_v44  }
  0x43   : > { %641 = vmatprep.mubr.f32.mxu0 %v1463_v0 }
  0x45   : > { %1280 = vmatmul.mubr.msk.f32.gmra.mxu0 %vm443_vm1, %v344_v46 }
  0x46   : > { %752 = vperm.xlu0 %1305, %v726_v45   ;;  %757 = vperm.xlu1 %1306, %v727_v47  }
  0x47   : > { %647 = vmatprep.mubr.f32.mxu0 %v1463_v0 }
  0x49   : > { %1281 = vmatmul.mubr.msk.f32.gmra.mxu0 %vm443_vm1, %v345_v49 }
  0x4a   : > { %742 = vperm.xlu0 %1305, %v724_v48   ;;  %747 = vperm.xlu1 %1306, %v725_v50  }
  0x4b   : > { %653 = vmatprep.mubr.f32.mxu0 %v1463_v0 }
  0x4d   : > { %1282 = vmatmul.mubr.msk.f32.gmra.mxu0 %vm443_vm1, %v346_v52 }
  0x4e   : > { %1033 = vperm.xlu0 %1305, %v1030_v51   ;;  %1068 = vmatprep.mubr.bf16.mxu0 %v1464_v1 }
  0x89   : > { %v1707_v53 = vpop.permute.xlu0 %435  ;;  %v1709_v54 = vpop.permute.xlu1 %425 }
  0x8d   : > { %v1711_v55 = vpop.permute.xlu0 %440  ;;  %v1713_v56 = vpop.permute.xlu1 %430 }
  0x91   : > { %v1715_v57 = vpop.permute.xlu0 %415  ;;  %v1717_v58 = vpop.permute.xlu1 %420 }
  0x95   : > { %v1719_v59 = vpop.permute.xlu0 %405  ;;  %v1721_v60 = vpop.permute.xlu1 %410 }
  0x99   : > { %v1723_v61 = vpop.permute.xlu0 %395  ;;  %v1725_v62 = vpop.permute.xlu1 %400 }
  0x9d   : > { %v1727_v63 = vpop.permute.xlu0 %385  ;;  %v1729_v2 = vpop.permute.xlu1 %390 }
  0xa1   : > { %v376_v3 = vpop.permute.xlu0 %375  ;;  %v381_v4 = vpop.permute.xlu1 %380 }
  0xa5   : > { %v366_v5 = vpop.permute.xlu0 %365  ;;  %v371_v9 = vpop.permute.xlu1 %370 }
  0xd1   : > { %v565_v6 = vpop.f32.mrf.mxu0 }
  0xd2   : > { %v566_v7 = vadd.f32 %v565_v6, %v366_v5 }
  0xd3   : > { %v567_v8 = vpop.f32.mrf.mxu0 }
  0xd4   : > { %v568_v10 = vadd.f32 %v567_v8, %v366_v5  ;;  %1315 = vtanh.f32 %v566_v7 }
  0xd5   : > { %v571_v11 = vpop.f32.mrf.mxu0 }
  0xd6   : > { %v572_v12 = vadd.f32 %v571_v11, %v371_v9 }
  0xd7   : > { %v573_v13 = vpop.f32.mrf.mxu0 }
  0xd8   : > { %1317 = vtanh.f32 %v572_v12  ;;  %v574_v14 = vadd.f32 %v573_v13, %v371_v9 }
  0xd9   : > { %1319 = vtanh.f32 %v568_v10  ;;  %v577_v15 = vpop.f32.mrf.mxu0 }
  0xda   : > { %1321 = vtanh.f32 %v574_v14  ;;  %v578_v16 = vadd.f32 %v577_v15, %v376_v3 }
  0xdb   : > { %v579_v17 = vpop.f32.mrf.mxu0 }
  0xdc   : > { %v580_v18 = vadd.f32 %v579_v17, %v376_v3  ;;  %1323 = vtanh.f32 %v578_v16 }
  0xdd   : > { %v583_v19 = vpop.f32.mrf.mxu0 }
  0xde   : > { %v584_v20 = vadd.f32 %v583_v19, %v381_v4 }
  0xdf   : > { %v585_v21 = vpop.f32.mrf.mxu0 }
  0xe0   : > { %1325 = vtanh.f32 %v584_v20  ;;  %v586_v22 = vadd.f32 %v585_v21, %v381_v4 }
  0xe1   : > { %1327 = vtanh.f32 %v580_v18  ;;  %v1731_v23 = vpop.f32.mrf.mxu0  ;;  %v1735_v25 = vpop.eup %1315 }
  0xe2   : > { %1329 = vtanh.f32 %v586_v22 }
  0xe3   : > { %v1733_v24 = vpop.f32.mrf.mxu0 }
  0xe5   : > { %v1737_v26 = vpop.eup %1317  ;;  %v1739_v27 = vpop.f32.mrf.mxu0 }
  0xe6   : > { %v1741_v28 = vpop.eup %1319  ;;  %v708_v29 = vpack.c.bf16 %v1737_v26, %v1735_v25  ;;  %v1310_v25 = vld [vmem:[%s1974_s4 + $0x18] sm:$0xff]   ;;  %v1311_v26 = vld [vmem:[%s1974_s4 + $0x20] sm:$0xff]  }
  0xe7   : > { %v1745_v30 = vpop.eup %1321  ;;  %v1747_v31 = vpop.f32.mrf.mxu0 }
  0xe8   : > { %v709_v32 = vpack.c.bf16 %v1745_v30, %v1741_v28  ;;  %v1309_v28 = vld [vmem:[%s1974_s4 + $0x10] sm:$0xff]  }
  0xe9   : > { %v1751_v33 = vpop.f32.mrf.mxu0  ;;  %v1753_v35 = vpop.eup %1323  ;;  %v1313_v30 = vld [vmem:[%s1974_s4 + $0x30] sm:$0xff]  }
  0xeb   : > { %v603_v34 = vpop.f32.mrf.mxu0 }
  0xec   : > { %v604_v22 = vadd.f32 %v603_v34, %v1723_v61 }
  0xed   : > { %v1755_v36 = vpop.eup %1325  ;;  %v607_v37 = vpop.f32.mrf.mxu0 }
  0xee   : > { %v1757_v38 = vpop.eup %1327  ;;  %v710_v39 = vpack.c.bf16 %v1755_v36, %v1753_v35  ;;  %v1308_v35 = vld [vmem:[%s1974_s4 + $0x8] sm:$0xff]   ;;  %v1837_v36 = vpop.permute.xlu0 %812 }
  0xef   : > { %v1761_v40 = vpop.eup %1329  ;;  %v609_v41 = vpop.f32.mrf.mxu0 }
  0xf0   : > { %v711_v42 = vpack.c.bf16 %v1761_v40, %v1757_v38  ;;  %v1839_v38 = vpop.permute.xlu1 %817 }
  0xf1   : > { %v613_v43 = vpop.f32.mrf.mxu0 }
  0xf2   : > { %v614_v21 = vadd.f32 %v613_v43, %v1719_v59  ;;  %v592_v43 = vadd.f32 %v1733_v24, %v1727_v63 }
  0xf3   : > { %v615_v44 = vpop.f32.mrf.mxu0 }
  0xf4   : > { %v1843_v40 = vpop.permute.xlu1 %807 }
  0xf5   : > { %v619_v45 = vpop.f32.mrf.mxu0 }
  0xf6   : > { %v620_v20 = vadd.f32 %v619_v45, %v1721_v60 }
  0xf7   : > { %v621_v46 = vpop.f32.mrf.mxu0 }
  0xf8   : > { %v622_v19 = vadd.f32 %v621_v46, %v1721_v60 }
  0xf9   : > { %v625_v47 = vpop.f32.mrf.mxu0 }
  0xfb   : > { %v627_v48 = vpop.f32.mrf.mxu0 }
  0xfc   : > { %v628_v18 = vadd.f32 %v627_v48, %v1715_v57 }
  0xfd   : > { %v631_v49 = vpop.f32.mrf.mxu0 }
  0xff   : > { %v633_v50 = vpop.f32.mrf.mxu0 }
 0x100   : > { %v634_v16 = vadd.f32 %v633_v50, %v1717_v58 }
 0x101   : > { %v637_v51 = vpop.f32.mrf.mxu0 }
 0x102   : > { %v638_v17 = vadd.f32 %v637_v51, %v1709_v54 }
 0x103   : > { %v639_v52 = vpop.f32.mrf.mxu0 }
 0x104   : > { %v640_v13 = vadd.f32 %v639_v52, %v1709_v54  ;;  %v610_v54 = vadd.f32 %v609_v41, %v1725_v62  ;;  %v602_v41 = vadd.f32 %v1751_v33, %v1723_v61  ;;  %v590_v61 = vadd.f32 %v1731_v23, %v1727_v63 }
 0x105   : > { %v643_v3 = vpop.f32.mrf.mxu0 }
 0x106   : > { %v644_v15 = vadd.f32 %v643_v3, %v1713_v56 }
 0x107   : > { %v645_v4 = vpop.f32.mrf.mxu0 }
 0x108   : > { %v646_v6 = vadd.f32 %v645_v4, %v1713_v56  ;;  %v616_v56 = vadd.f32 %v615_v44, %v1719_v59  ;;  %v598_v44 = vadd.f32 %v1747_v31, %v1729_v2 }
 0x109   : > { %v649_v5 = vpop.f32.mrf.mxu0 }
 0x10a   : > { %1331 = vtanh.f32 %v646_v6  ;;  %v650_v11 = vadd.f32 %v649_v5, %v1707_v53 }
 0x10b   : > { %v651_v7 = vpop.f32.mrf.mxu0 }
 0x10c   : > { %v652_v8 = vadd.f32 %v651_v7, %v1707_v53  ;;  %v632_v53 = vadd.f32 %v631_v49, %v1717_v58 }
 0x10d   : > { %v655_v9 = vpop.f32.mrf.mxu0 }
 0x10e   : > { %v656_v10 = vadd.f32 %v655_v9, %v1711_v55  ;;  %1333 = vtanh.f32 %v652_v8 }
 0x10f   : > { %v657_v12 = vpop.f32.mrf.mxu0 }
 0x110   : > { %v658_v14 = vadd.f32 %v657_v12, %v1711_v55  ;;  %1335 = vtanh.f32 %v656_v10  ;;  %v626_v55 = vadd.f32 %v625_v47, %v1715_v57  ;;  %v608_v57 = vadd.f32 %v607_v37, %v1725_v62 }
 0x111   : > { %v596_v62 = vadd.f32 %v1739_v27, %v1729_v2 }
 0x112   : > { %1337 = vtanh.f32 %v658_v14 }
 0x113   : > { %1339 = vtanh.f32 %v650_v11 }
 0x114   : > { %1341 = vtanh.f32 %v640_v13 }
 0x115   : > { %1343 = vtanh.f32 %v644_v15 }
 0x116   : > { %1345 = vtanh.f32 %v634_v16 }
 0x117   : > { %1347 = vtanh.f32 %v638_v17  ;;  %v1332_v58 = vpop.eup %1331 }
 0x118   : > { %1349 = vtanh.f32 %v628_v18 }
 0x119   : > { %1351 = vtanh.f32 %v632_v53  ;;  %v1307_v53 = vld [vmem:[%s1974_s4] sm:$0xff]  }
 0x11a   : > { %1353 = vtanh.f32 %v622_v19  ;;  %v1847_v19 = vpop.permute.xlu1 %797 }
 0x11b   : > { %1355 = vtanh.f32 %v626_v55  ;;  %v1334_v46 = vpop.eup %1333 }
 0x11c   : > { %1357 = vtanh.f32 %v616_v56 }
 0x11d   : > { %1359 = vtanh.f32 %v620_v20  ;;  %v1336_v47 = vpop.eup %1335 }
 0x11e   : > { %1361 = vtanh.f32 %v610_v54 }
 0x11f   : > { %v1338_v60 = vpop.eup %1337  ;;  %1363 = vtanh.f32 %v614_v21 }
 0x120   : > { %v1340_v59 = vpop.eup %1339  ;;  %1365 = vtanh.f32 %v604_v22  ;;  %v723_v34 = vpack.c.bf16 %v1338_v60, %v1334_v46 }
 0x121   : > { %v1342_v45 = vpop.eup %1341  ;;  %1367 = vtanh.f32 %v608_v57  ;;  %v722_v37 = vpack.c.bf16 %v1336_v47, %v1340_v59 }
 0x122   : > { %v1344_v48 = vpop.eup %1343  ;;  %1369 = vtanh.f32 %v598_v44  ;;  %868 = vmatprep.subr.bf16.mxu1 %v723_v34  ;;  %v721_v31 = vpack.c.bf16 %v1332_v58, %v1342_v45 }
 0x123   : > { %v1346_v49 = vpop.eup %1345  ;;  %1371 = vtanh.f32 %v602_v41  ;;  %869 = vmatpush1.bf16.msra.mxu1 %v722_v37 }
 0x124   : > { %v1348_v33 = vpop.eup %1347  ;;  %1373 = vtanh.f32 %v592_v43  ;;  %870 = vmatprep.subr.bf16.mxu1 %v721_v31 }
 0x125   : > { %v1350_v24 = vpop.eup %1349  ;;  %1375 = vtanh.f32 %v596_v62  ;;  %v720_v50 = vpack.c.bf16 %v1344_v48, %v1348_v33 }
 0x126   : > { %v1352_v51 = vpop.eup %1351  ;;  %v719_v2 = vpack.c.bf16 %v1346_v49, %v1350_v24  ;;  %1377 = vtanh.f32 %v590_v61 }
 0x127   : > { %v1354_v27 = vpop.eup %1353  ;;  %871 = vmatpush1.bf16.msra.mxu1 %v720_v50 }
 0x128   : > { %v1356_v52 = vpop.eup %1355  ;;  %872 = vmatprep.subr.bf16.mxu1 %v719_v2 }
 0x129   : > { %v1358_v3 = vpop.eup %1357  ;;  %v718_v4 = vpack.c.bf16 %v1352_v51, %v1356_v52 }
 0x12a   : > { %v1360_v5 = vpop.eup %1359  ;;  %v717_v6 = vpack.c.bf16 %v1354_v27, %v1358_v3 }
 0x12b   : > { %v1362_v63 = vpop.eup %1361  ;;  %873 = vmatpush1.bf16.msra.mxu1 %v718_v4 }
 0x12c   : > { %v1364_v23 = vpop.eup %1363  ;;  %874 = vmatprep.subr.bf16.mxu1 %v717_v6 }
 0x12d   : > { %v1366_v7 = vpop.eup %1365  ;;  %v716_v8 = vpack.c.bf16 %v1360_v5, %v1364_v23 }
 0x12e   : > { %v1368_v9 = vpop.eup %1367  ;;  %v715_v10 = vpack.c.bf16 %v1362_v63, %v1366_v7 }
 0x12f   : > { %v1370_v11 = vpop.eup %1369  ;;  %875 = vmatpush1.bf16.msra.mxu1 %v716_v8 }
 0x130   : > { %v1372_v12 = vpop.eup %1371  ;;  %876 = vmatprep.subr.bf16.mxu1 %v715_v10 }
 0x131   : > { %v1374_v13 = vpop.eup %1373  ;;  %v714_v14 = vpack.c.bf16 %v1368_v9, %v1372_v12 }
 0x132   : > { %v1376_v15 = vpop.eup %1375  ;;  %v713_v16 = vpack.c.bf16 %v1370_v11, %v1374_v13 }
 0x133   : > { %877 = vmatpush1.bf16.msra.mxu1 %v714_v14  ;;  %v1378_v17 = vpop.eup %1377 }
 0x134   : > { %878 = vmatprep.subr.bf16.mxu1 %v713_v16  ;;  %v712_v18 = vpack.c.bf16 %v1376_v15, %v1378_v17 }
 0x137   : > { %879 = vmatpush1.bf16.msra.mxu1 %v712_v18 }
 0x138   : > { %880 = vmatprep.subr.bf16.mxu1 %v711_v42 }
 0x13b   : > { %881 = vmatpush1.bf16.msra.mxu1 %v710_v39  ;;  %v1841_v39 = vpop.permute.xlu0 %802 }
 0x13c   : > { %882 = vmatprep.subr.bf16.mxu1 %v709_v32  ;;  %v1314_v32 = vld [vmem:[%s1974_s4 + $0x38] sm:$0xff]  }
 0x13f   : > { %883 = vmatpush1.bf16.msra.mxu1 %v708_v29  ;;  %v1312_v29 = vld [vmem:[%s1974_s4 + $0x28] sm:$0xff]   ;;  %v1845_v42 = vpop.permute.xlu0 %792 }
 0x142   : > { %901 = vmatmul.mubr.bf16.vlgmr.msra.gmra.mxu1 %v1307_v53 }
 0x143   : > { %910 = vmatprep.mubr.bf16.mxu1 %v1464_v1  ;;  %v1849_v55 = vpop.permute.xlu0 %782 }
 0x147   : > { %v1853_v56 = vpop.permute.xlu0 %772 }
 0x14a   : > { %911 = vmatmul.mubr.bf16.gmra.mxu1 %v1308_v35 }
 0x14b   : > { %920 = vmatprep.mubr.bf16.mxu1 %v1464_v1  ;;  %v1857_v54 = vpop.permute.xlu0 %762 }
 0x14f   : > { %v753_v58 = vpop.permute.xlu0 %752 }
 0x152   : > { %921 = vmatmul.mubr.bf16.gmra.mxu1 %v1309_v28 }
 0x153   : > { %930 = vmatprep.mubr.bf16.mxu1 %v1464_v1  ;;  %v743_v57 = vpop.permute.xlu0 %742 }
 0x15a   : > { %931 = vmatmul.mubr.bf16.gmra.mxu1 %v1310_v25 }
 0x15b   : > { %940 = vmatprep.mubr.bf16.mxu1 %v1464_v1 }
 0x162   : > { %941 = vmatmul.mubr.bf16.gmra.mxu1 %v1311_v26 }
 0x163   : > { %950 = vmatprep.mubr.bf16.mxu1 %v1464_v1 }
 0x16a   : > { %951 = vmatmul.mubr.bf16.gmra.mxu1 %v1312_v29 }
 0x16b   : > { %960 = vmatprep.mubr.bf16.mxu1 %v1464_v1 }
 0x172   : > { %961 = vmatmul.mubr.bf16.gmra.mxu1 %v1313_v30 }
 0x173   : > { %970 = vmatprep.mubr.bf16.mxu1 %v1464_v1  ;;  %v1851_v1 = vpop.permute.xlu1 %787 }
 0x177   : > { %v1855_v20 = vpop.permute.xlu1 %777 }
 0x17a   : > { %971 = vmatmul.mubr.bf16.gmra.mxu1 %v1314_v32 }
 0x17b   : > { %v1859_v21 = vpop.permute.xlu1 %767 }
 0x17f   : > { %v758_v22 = vpop.permute.xlu1 %757 }
 0x183   : > { %v748_v60 = vpop.permute.xlu1 %747 }
 0x202   : > { %v902_v46 = vpop.f32.mrf.mxu1 }
 0x203   : > { %v903_v47 = vadd.f32 %v902_v46, %v743_v57 }
 0x204   : > { %v904_v44 = vpop.f32.mrf.mxu1 }
 0x205   : > { %v905_v41 = vadd.f32 %v904_v44, %v743_v57  ;;  %1379 = vtanh.f32 %v903_v47 }
 0x206   : > { %v906_v59 = vpop.f32.mrf.mxu1 }
 0x207   : > { %v907_v43 = vadd.f32 %v906_v59, %v748_v60 }
 0x208   : > { %v908_v34 = vpop.f32.mrf.mxu1 }
 0x209   : > { %1381 = vtanh.f32 %v907_v43  ;;  %v909_v45 = vadd.f32 %v908_v34, %v748_v60 }
 0x20a   : > { %1383 = vtanh.f32 %v905_v41  ;;  %v912_v62 = vpop.f32.mrf.mxu1 }
 0x20b   : > { %1385 = vtanh.f32 %v909_v45  ;;  %v913_v37 = vadd.f32 %v912_v62, %v753_v58 }
 0x20c   : > { %v914_v48 = vpop.f32.mrf.mxu1 }
 0x20d   : > { %v915_v31 = vadd.f32 %v914_v48, %v753_v58  ;;  %1387 = vtanh.f32 %v913_v37 }
 0x20e   : > { %v916_v49 = vpop.f32.mrf.mxu1 }
 0x20f   : > { %v917_v61 = vadd.f32 %v916_v49, %v758_v22 }
 0x210   : > { %v918_v33 = vpop.f32.mrf.mxu1 }
 0x211   : > { %1389 = vtanh.f32 %v917_v61  ;;  %v919_v24 = vadd.f32 %v918_v33, %v758_v22 }
 0x212   : > { %1391 = vtanh.f32 %v915_v31  ;;  %v1861_v50 = vpop.f32.mrf.mxu1  ;;  %v1865_v2 = vpop.eup %1379 }
 0x213   : > { %1393 = vtanh.f32 %v919_v24 }
 0x214   : > { %v1863_v51 = vpop.f32.mrf.mxu1 }
 0x216   : > { %v1867_v27 = vpop.eup %1381  ;;  %v1869_v52 = vpop.f32.mrf.mxu1 }
 0x217   : > { %v1871_v3 = vpop.eup %1383  ;;  %v1014_v4 = vpack.c.bf16 %v1867_v27, %v1865_v2 }
 0x218   : > { %v1875_v5 = vpop.eup %1385  ;;  %v1877_v6 = vpop.f32.mrf.mxu1 }
 0x219   : > { %v1015_v63 = vpack.c.bf16 %v1875_v5, %v1871_v3 }
 0x21a   : > { %v1881_v23 = vpop.f32.mrf.mxu1  ;;  %v1883_v8 = vpop.eup %1387 }
 0x21c   : > { %v934_v7 = vpop.f32.mrf.mxu1 }
 0x21d   : > { %v935_v33 = vadd.f32 %v934_v7, %v1853_v56 }
 0x21e   : > { %v1885_v9 = vpop.eup %1389  ;;  %v936_v10 = vpop.f32.mrf.mxu1 }
 0x21f   : > { %v1887_v11 = vpop.eup %1391  ;;  %v1016_v12 = vpack.c.bf16 %v1885_v9, %v1883_v8 }
 0x220   : > { %v1891_v13 = vpop.eup %1393  ;;  %v938_v14 = vpop.f32.mrf.mxu1 }
 0x221   : > { %v1017_v15 = vpack.c.bf16 %v1891_v13, %v1887_v11 }
 0x222   : > { %v942_v16 = vpop.f32.mrf.mxu1 }
 0x223   : > { %v943_v61 = vadd.f32 %v942_v16, %v1849_v55  ;;  %v925_v16 = vadd.f32 %v1863_v51, %v1857_v54 }
 0x224   : > { %v944_v17 = vpop.f32.mrf.mxu1 }
 0x226   : > { %v946_v18 = vpop.f32.mrf.mxu1 }
 0x227   : > { %v947_v49 = vadd.f32 %v946_v18, %v1851_v1 }
 0x228   : > { %v948_v53 = vpop.f32.mrf.mxu1 }
 0x229   : > { %v949_v31 = vadd.f32 %v948_v53, %v1851_v1 }
 0x22a   : > { %v952_v35 = vpop.f32.mrf.mxu1 }
 0x22c   : > { %v954_v28 = vpop.f32.mrf.mxu1 }
 0x22d   : > { %v955_v48 = vadd.f32 %v954_v28, %v1845_v42 }
 0x22e   : > { %v956_v25 = vpop.f32.mrf.mxu1 }
 0x230   : > { %v958_v26 = vpop.f32.mrf.mxu1 }
 0x231   : > { %v959_v62 = vadd.f32 %v958_v26, %v1847_v19 }
 0x232   : > { %v962_v29 = vpop.f32.mrf.mxu1 }
 0x233   : > { %v963_v37 = vadd.f32 %v962_v29, %v1841_v39 }
 0x234   : > { %v964_v30 = vpop.f32.mrf.mxu1 }
 0x235   : > { %v965_v43 = vadd.f32 %v964_v30, %v1841_v39  ;;  %v939_v39 = vadd.f32 %v938_v14, %v1855_v20  ;;  %v933_v14 = vadd.f32 %v1881_v23, %v1853_v56  ;;  %v923_v56 = vadd.f32 %v1861_v50, %v1857_v54 }
 0x236   : > { %v966_v32 = vpop.f32.mrf.mxu1 }
 0x237   : > { %v967_v45 = vadd.f32 %v966_v32, %v1843_v40 }
 0x238   : > { %v968_v58 = vpop.f32.mrf.mxu1 }
 0x239   : > { %v969_v46 = vadd.f32 %v968_v58, %v1843_v40  ;;  %v945_v40 = vadd.f32 %v944_v17, %v1849_v55  ;;  %v929_v17 = vadd.f32 %v1877_v6, %v1859_v21 }
 0x23a   : > { %v972_v22 = vpop.f32.mrf.mxu1 }
 0x23b   : > { %1395 = vtanh.f32 %v969_v46  ;;  %v973_v41 = vadd.f32 %v972_v22, %v1837_v36 }
 0x23c   : > { %v974_v57 = vpop.f32.mrf.mxu1 }
 0x23d   : > { %v975_v47 = vadd.f32 %v974_v57, %v1837_v36  ;;  %v957_v36 = vadd.f32 %v956_v25, %v1847_v19 }
 0x23e   : > { %v976_v44 = vpop.f32.mrf.mxu1 }
 0x23f   : > { %v977_v60 = vadd.f32 %v976_v44, %v1839_v38  ;;  %1397 = vtanh.f32 %v975_v47 }
 0x240   : > { %v978_v59 = vpop.f32.mrf.mxu1 }
 0x241   : > { %v979_v34 = vadd.f32 %v978_v59, %v1839_v38  ;;  %1399 = vtanh.f32 %v977_v60  ;;  %v953_v38 = vadd.f32 %v952_v35, %v1845_v42  ;;  %v937_v42 = vadd.f32 %v936_v10, %v1855_v20 }
 0x242   : > { %v927_v20 = vadd.f32 %v1869_v52, %v1859_v21 }
 0x243   : > { %1401 = vtanh.f32 %v979_v34 }
 0x244   : > { %1403 = vtanh.f32 %v973_v41 }
 0x245   : > { %1405 = vtanh.f32 %v965_v43 }
 0x246   : > { %1407 = vtanh.f32 %v967_v45 }
 0x247   : > { %1409 = vtanh.f32 %v959_v62 }
 0x248   : > { %1411 = vtanh.f32 %v963_v37  ;;  %v1396_v19 = vpop.eup %1395 }
 0x249   : > { %1413 = vtanh.f32 %v955_v48  ;;  %v1013_v48 = vld [vmem:[%s1976_s6] sm:$0x3] }
 0x24a   : > { %1415 = vtanh.f32 %v957_v36  ;;  %v1034_v36 = vpop.permute.xlu0 %1033 }
 0x24b   : > { %1417 = vtanh.f32 %v949_v31 }
 0x24c   : > { %1419 = vtanh.f32 %v953_v38  ;;  %v1398_v24 = vpop.eup %1397 }
 0x24d   : > { %1421 = vtanh.f32 %v945_v40 }
 0x24e   : > { %1423 = vtanh.f32 %v947_v49  ;;  %v1400_v53 = vpop.eup %1399  ;;  %v1118_v49 = vlaneseq }
 0x24f   : > { %1425 = vtanh.f32 %v939_v39 }
 0x250   : > { %v1402_v1 = vpop.eup %1401  ;;  %1427 = vtanh.f32 %v943_v61 }
 0x251   : > { %v1404_v55 = vpop.eup %1403  ;;  %1429 = vtanh.f32 %v935_v33  ;;  %v1029_v7 = vpack.c.bf16 %v1402_v1, %v1398_v24  ;;  %v1119_v24 = vshrl.u32 %v1118_v49, 7 }
 0x252   : > { %v1406_v18 = vpop.eup %1405  ;;  %1431 = vtanh.f32 %v937_v42  ;;  %v1028_v10 = vpack.c.bf16 %v1400_v53, %v1404_v55 }
 0x253   : > { %v1408_v35 = vpop.eup %1407  ;;  %1433 = vtanh.f32 %v929_v17  ;;  %1036 = vmatprep.subr.bf16.mxu0 %v1029_v7  ;;  %v1027_v6 = vpack.c.bf16 %v1396_v19, %v1406_v18  ;;  %v1127_v7 = vsub.s32 1, %v1119_v24 }
 0x254   : > { %v1410_v28 = vpop.eup %1409  ;;  %1435 = vtanh.f32 %v933_v14  ;;  %1037 = vmatpush1.bf16.msra.mxu0 %v1028_v10  ;;  %v1123_v14 = vsub.s32 0, %v1119_v24 }
 0x255   : > { %v1412_v23 = vpop.eup %1411  ;;  %1437 = vtanh.f32 %v925_v16  ;;  %1038 = vmatprep.subr.bf16.mxu0 %v1027_v6  ;;  %v1120_v16 = vld [vmem:[%s320_s10] sm:$0x3] }
 0x256   : > { %v1414_v51 = vpop.eup %1413  ;;  %1439 = vtanh.f32 %v927_v20  ;;  %v1026_v25 = vpack.c.bf16 %v1408_v35, %v1412_v23  ;;  %v1124_v18 = vrot.slane %v1120_v16, %v1123_v14  ;;  %v1128_v20 = vrot.slane %v1120_v16, %v1127_v7 }
 0x257   : > { %v1416_v26 = vpop.eup %1415  ;;  %v1025_v21 = vpack.c.bf16 %v1410_v28, %v1414_v51  ;;  %1441 = vtanh.f32 %v923_v56 }
 0x258   : > { %v1418_v52 = vpop.eup %1417  ;;  %1039 = vmatpush1.bf16.msra.mxu0 %v1026_v25  ;;  %vm1129_vm3 = vcmp.eq.s32.totalorder %v1119_v24, %v1124_v18  ;;  %vm1130_vm4 = vcmp.eq.s32.totalorder %v1119_v24, %v1128_v20 }
 0x259   : > { %v1420_v29 = vpop.eup %1419  ;;  %1040 = vmatprep.subr.bf16.mxu0 %v1025_v21  ;;  %v1291_v10 = vsel %vm1129_vm3, 1.0, %v1463_v0  ;;  %v1292_v6 = vsel %vm1130_vm4, 1.0, %v1463_v0 }
 0x25a   : > { %v1422_v30 = vpop.eup %1421  ;;  %v1024_v32 = vpack.c.bf16 %v1416_v26, %v1420_v29 }
 0x25b   : > { %v1424_v58 = vpop.eup %1423  ;;  %v1023_v22 = vpack.c.bf16 %v1418_v52, %v1422_v30 }
 0x25c   : > { %v1426_v54 = vpop.eup %1425  ;;  %1041 = vmatpush1.bf16.msra.mxu0 %v1024_v32 }
 0x25d   : > { %v1428_v50 = vpop.eup %1427  ;;  %1042 = vmatprep.subr.bf16.mxu0 %v1023_v22 }
 0x25e   : > { %v1430_v46 = vpop.eup %1429  ;;  %v1022_v57 = vpack.c.bf16 %v1424_v58, %v1428_v50 }
 0x25f   : > { %v1432_v47 = vpop.eup %1431  ;;  %v1021_v44 = vpack.c.bf16 %v1426_v54, %v1430_v46 }
 0x260   : > { %v1434_v60 = vpop.eup %1433  ;;  %1043 = vmatpush1.bf16.msra.mxu0 %v1022_v57 }
 0x261   : > { %v1436_v41 = vpop.eup %1435  ;;  %1044 = vmatprep.subr.bf16.mxu0 %v1021_v44 }
 0x262   : > { %v1438_v59 = vpop.eup %1437  ;;  %v1020_v43 = vpack.c.bf16 %v1432_v47, %v1436_v41 }
 0x263   : > { %v1440_v34 = vpop.eup %1439  ;;  %v1019_v45 = vpack.c.bf16 %v1434_v60, %v1438_v59 }
 0x264   : > { %1045 = vmatpush1.bf16.msra.mxu0 %v1020_v43  ;;  %v1442_v62 = vpop.eup %1441 }
 0x265   : > { %1046 = vmatprep.subr.bf16.mxu0 %v1019_v45  ;;  %v1018_v37 = vpack.c.bf16 %v1440_v34, %v1442_v62 }
 0x268   : > { %1047 = vmatpush1.bf16.msra.mxu0 %v1018_v37 }
 0x269   : > { %1048 = vmatprep.subr.bf16.mxu0 %v1017_v15 }
 0x26c   : > { %1049 = vmatpush1.bf16.msra.mxu0 %v1016_v12 }
 0x26d   : > { %1050 = vmatprep.subr.bf16.mxu0 %v1015_v63 }
 0x270   : > { %1051 = vmatpush1.bf16.msra.mxu0 %v1014_v4 }
 0x273   : > { %1069 = vmatmul.mubr.bf16.vlgmr.msra.gmra.mxu0 %v1013_v48 }
 0x333   : > { %v1070_v11 = vpop.f32.mrf.mxu0 }
 0x334   : > { %v1939_v13 = vadd.f32 %v1070_v11, %v1034_v36 }
 0x335   : > { %v1072_v8 = vpop.f32.mrf.mxu0 }
 0x336   : > { %v1078_v9 = vsel %vm1077_vm2, %v1939_v13, -inf  ;;  %v1943_v3 = vadd.f32 %v1072_v8, %v1034_v36  ;;  %v1175_v14 = vrot.slane %v1939_v13, 2 }
 0x337   : > { %v1079_v5 = vrot.slane %v1078_v9, 4  ;;  %v1074_v63 = vpop.f32.mrf.mxu0 }
 0x338   : > { %v1085_v2 = vsel %vm1077_vm2, %v1943_v3, -inf }
 0x339   : > { %v1080_v27 = vmax.f32 %v1078_v9, %v1079_v5  ;;  %v1086_v4 = vrot.slane %v1085_v2, 4  ;;  %v1075_v12 = vpop.f32.mrf.mxu0 }
 0x33b   : > { %v1081_v15 = vrot.slane %v1080_v27, 2  ;;  %v1087_v31 = vmax.f32 %v1085_v2, %v1086_v4 }
 0x33d   : > { %v1082_v38 = vmax.f32 %v1080_v27, %v1081_v15  ;;  %v1088_v40 = vrot.slane %v1087_v31, 2 }
 0x33f   : > { %v1083_v39 = vrot.slane %v1082_v38, 1  ;;  %v1089_v61 = vmax.f32 %v1087_v31, %v1088_v40 }
 0x341   : > { %v1084_v19 = vmax.f32 %v1082_v38, %v1083_v39  ;;  %v1090_v33 = vrot.slane %v1089_v61, 1 }
 0x343   : > { %v1092_v42 = vsub.f32 %v1939_v13, %v1084_v19  ;;  %v1091_v53 = vmax.f32 %v1089_v61, %v1090_v33 }
 0x345   : > { %v1094_v17 = vmul.f32 1.442695, %v1092_v42  ;;  %v1093_v1 = vsub.f32 %v1943_v3, %v1091_v53  ;;  %v1135_v56 = vmul.f32 %v1291_v10, %v1092_v42 }
 0x347   : > { %1443 = vpow2.f32 %v1094_v17  ;;  %v1096_v55 = vmul.f32 1.442695, %v1093_v1  ;;  %v1136_v21 = vmul.f32 %v1292_v6, %v1093_v1  ;;  %v1137_v58 = vsel %vm1077_vm2, %v1135_v56, 0.0 }
 0x348   : > { %v1138_v47 = vrot.slane %v1137_v58, 4 }
 0x349   : > { %1445 = vpow2.f32 %v1096_v55  ;;  %v1144_v46 = vsel %vm1077_vm2, %v1136_v21, 0.0 }
 0x34a   : > { %v1145_v43 = vrot.slane %v1144_v46, 4  ;;  %v1139_v62 = vadd.f32 %v1138_v47, %v1137_v58 }
 0x34c   : > { %v1146_v11 = vadd.f32 %v1145_v43, %v1144_v46  ;;  %v1140_v9 = vrot.slane %v1139_v62, 2 }
 0x34e   : > { %v1147_v63 = vrot.slane %v1146_v11, 2  ;;  %v1141_v27 = vadd.f32 %v1140_v9, %v1139_v62 }
 0x350   : > { %v1148_v12 = vadd.f32 %v1147_v63, %v1146_v11  ;;  %v1142_v31 = vrot.slane %v1141_v27, 1 }
 0x352   : > { %v1149_v40 = vrot.slane %v1148_v12, 1  ;;  %v1143_v33 = vadd.f32 %v1142_v31, %v1141_v27 }
 0x354   : > { %v1444_v35 = vpop.eup %1443  ;;  %v1150_v16 = vadd.f32 %v1149_v40, %v1148_v12 }
 0x355   : > { %v1098_v28 = vsel %vm1077_vm2, %v1444_v35, 0.0  ;;  %v1153_v23 = vmul.f32 %v1444_v35, %v1092_v42  ;;  %v1176_v35 = vrot.slane %v1943_v3, 2 }
 0x356   : > { %v1446_v51 = vpop.eup %1445  ;;  %v1099_v25 = vrot.slane %v1098_v28, 4 }
 0x357   : > { %v1105_v26 = vsel %vm1077_vm2, %v1446_v51, 0.0  ;;  %v1154_v52 = vmul.f32 %v1446_v51, %v1093_v1  ;;  %v1155_v30 = vsel %vm1077_vm2, %v1153_v23, 0.0 }
 0x358   : > { %v1100_v29 = vadd.f32 %v1099_v25, %v1098_v28  ;;  %v1106_v32 = vrot.slane %v1105_v26, 4  ;;  %v1156_v50 = vrot.slane %v1155_v30, 4 }
 0x359   : > { %v1162_v0 = vsel %vm1077_vm2, %v1154_v52, 0.0 }
 0x35a   : > { %v1101_v22 = vrot.slane %v1100_v29, 2  ;;  %v1107_v54 = vadd.f32 %v1106_v32, %v1105_v26  ;;  %v1163_v60 = vrot.slane %v1162_v0, 4  ;;  %v1157_v34 = vadd.f32 %v1156_v50, %v1155_v30 }
 0x35c   : > { %v1102_v57 = vadd.f32 %v1101_v22, %v1100_v29  ;;  %v1108_v44 = vrot.slane %v1107_v54, 2  ;;  %v1164_v48 = vadd.f32 %v1163_v60, %v1162_v0  ;;  %v1158_v8 = vrot.slane %v1157_v34, 2 }
 0x35e   : > { %v1103_v41 = vrot.slane %v1102_v57, 1  ;;  %v1109_v59 = vadd.f32 %v1108_v44, %v1107_v54  ;;  %v1165_v5 = vrot.slane %v1164_v48, 2  ;;  %v1159_v2 = vadd.f32 %v1158_v8, %v1157_v34 }
 0x360   : > { %v1104_v45 = vadd.f32 %v1103_v41, %v1102_v57  ;;  %v1110_v37 = vrot.slane %v1109_v59, 1  ;;  %v1166_v4 = vadd.f32 %v1165_v5, %v1164_v48  ;;  %v1160_v15 = vrot.slane %v1159_v2, 1 }
 0x362   : > { %1447 = vlog2.f32 %v1104_v45  ;;  %v1111_v36 = vadd.f32 %v1110_v37, %v1109_v59  ;;  %v1167_v38 = vrot.slane %v1166_v4, 1  ;;  %v1161_v39 = vadd.f32 %v1160_v15, %v1159_v2 }
 0x363   : > { %1449 = vrcp.f32 %v1104_v45 }
 0x364   : > { %1451 = vlog2.f32 %v1111_v36  ;;  %v1168_v53 = vadd.f32 %v1167_v38, %v1166_v4 }
 0x365   : > { %1453 = vrcp.f32 %v1111_v36 }
 0x36f   : > { %v1448_v49 = vpop.eup %1447 }
 0x370   : > { %v1450_v61 = vpop.eup %1449  ;;  %v1113_v19 = vmul.f32 0.6931472, %v1448_v49 }
 0x371   : > { %v1452_v24 = vpop.eup %1451  ;;  %v1169_v42 = vmul.f32 %v1450_v61, %v1161_v39 }
 0x372   : > { %v1454_v17 = vpop.eup %1453  ;;  %v1151_v1 = vsub.f32 %v1143_v33, %v1113_v19  ;;  %v1115_v55 = vmul.f32 0.6931472, %v1452_v24 }
 0x373   : > { %v1171_v7 = vsub.f32 %v1113_v19, %v1169_v42  ;;  %v1170_v18 = vmul.f32 %v1454_v17, %v1168_v53 }
 0x374   : > { %v1180_v20 = vsel %vm1179_vm5, %v1151_v1, %v1175_v14  ;;  %v1152_v10 = vsub.f32 %v1150_v16, %v1115_v55 }
 0x375   : > { %v1172_v6 = vsub.f32 %v1115_v55, %v1170_v18  ;;  %v1183_v56 = vsel %vm1182_vm6, %v1180_v20, %v1171_v7 }
 0x376   : > { %v1181_v28 = vsel %vm1179_vm5, %v1152_v10, %v1176_v35 }
 0x377   : > { %v1184_v23 = vsel %vm1182_vm6, %v1181_v28, %v1172_v6 }
 0x378   : > { %v1187_v51 = vcombine.low %v1183_v56, %v1184_v23 }
 0x37a   : > { %1189 = vst [vmem:[%s326_s14] sm:$0x77] %v1187_v51 }
 0x37b PF: > { %s18_s27 = sadd.s32 1, %s1461_s27  }
 0x37c   : > { %p15_p4 = scmp.ge.s32.totalorder %s18_s27, 4  }
 0x37e   :  { %17 = sbr.rel (!%p15_p4) target bundleno = 1 (0x1), region = 85 }

</bundles_post_ra>
